<compile_context>
chip_gen: v6e
topology: v6e:2x2x1
jax: 0.10.0
libtpu: 0.0.40
codegen_flags: <defaults>
</compile_context>

<pallas_src>
import functools

import jax
import jax.numpy as jnp
from jax.experimental import pallas as pl
from jax.experimental.pallas import tpu as pltpu


_LANE = 128
_MAX_TILE = 512                      # weight tile (tk, tn) upper bound
_TAIL_VMEM_BUDGET = 6 * 1024 * 1024  # fuse trailing layers up to this many bf16 bytes
_VMEM_LIMIT_BYTES = 32 * 1024 * 1024 # safe on v5e/v6e (128 MiB) and v7x (64 MiB)
_NEG_SLOPE = 0.01                    # LeakyReLU default slope


def _round_up(n, m):
    return ((n + m - 1) // m) * m


def _padded_dim(d, max_tile=_MAX_TILE):
    """Pad a feature dim so it is either a multiple of the tile (big dims) or
    a multiple of 128 lanes (small dims)."""
    if d >= max_tile:
        return _round_up(d, max_tile)
    return _round_up(d, _LANE)


# ----------------------------------------------------------------------------
# Tiled kernel for the big layers:  out = LeakyReLU(x @ W + b)
#   grid = (Np//tn, Kp//tk); reduction axis (k) is last; output block index is
#   independent of k, so o_ref is the resident accumulator.
# ----------------------------------------------------------------------------
def _dense_kernel(x_ref, w_ref, b_ref, o_ref, *, neg_slope):
    k = pl.program_id(1)

    @pl.when(k == 0)
    def _():
        o_ref[...] = jnp.zeros_like(o_ref)

    # x is fully resident as (nk, Bp, tk); pick the k-th chunk (leading axis).
    x_blk = x_ref[k].astype(jnp.bfloat16)                    # (Bp, tk)
    o_ref[...] += jnp.dot(x_blk, w_ref[...],
                          preferred_element_type=jnp.float32)

    @pl.when(k == pl.num_programs(1) - 1)
    def _():
        z = o_ref[...] + b_ref[...]
        o_ref[...] = jnp.where(z > 0, z, neg_slope * z)


def dense_layer_tiled(x, w_bf16, b, *, tk, tn, neg_slope=_NEG_SLOPE):
    """x: (Bp, Kp) f32; w_bf16: (Kp, Np) bf16; b: (1, Np) f32.  All padded."""
    Bp, Kp = x.shape
    Kp2, Np = w_bf16.shape
    assert Kp == Kp2 and Kp % tk == 0 and Np % tn == 0 and Bp % 8 == 0
    nk = Kp // tk

    # Pre-chunk x along K into the leading axis so the whole activation stays
    # resident in VMEM and chunks are selected with supported leading-axis
    # dynamic indexing (no per-n re-DMA of x).
    x_chunks = x.reshape(Bp, nk, tk).transpose(1, 0, 2)      # (nk, Bp, tk)

    kernel = functools.partial(_dense_kernel, neg_slope=neg_slope)
    return pl.pallas_call(
        kernel,
        out_shape=jax.ShapeDtypeStruct((Bp, Np), jnp.float32),
        grid_spec=pltpu.PrefetchScalarGridSpec(
            num_scalar_prefetch=0,
            grid=(Np // tn, nk),
            in_specs=[
                # Resident activation (constant block index => fetched once).
                pl.BlockSpec((nk, Bp, tk), lambda n, k: (0, 0, 0)),
                # Streaming bf16 weight tile.
                pl.BlockSpec((tk, tn), lambda n, k: (k, n)),
                # Bias tile.
                pl.BlockSpec((1, tn), lambda n, k: (0, n)),
            ],
            out_specs=pl.BlockSpec((Bp, tn), lambda n, k: (0, n)),
        ),
        compiler_params=pltpu.CompilerParams(
            dimension_semantics=("parallel", "arbitrary"),
            vmem_limit_bytes=_VMEM_LIMIT_BYTES),
    )(x_chunks, w_bf16, b)


# ----------------------------------------------------------------------------
# Fused tail kernel: all remaining (small) layers in one call, weights resident
# in VMEM.  LeakyReLU between layers, masked softmax at the end.
# ----------------------------------------------------------------------------
def _tail_kernel(*refs, n_layers, neg_slope, n_valid):
    x_ref = refs[0]
    w_refs = refs[1:1 + n_layers]
    b_refs = refs[1 + n_layers:1 + 2 * n_layers]
    o_ref = refs[1 + 2 * n_layers]

    h = x_ref[...]
    for i in range(n_layers):
        z = jnp.dot(h.astype(jnp.bfloat16), w_refs[i][...],
                    preferred_element_type=jnp.float32) + b_refs[i][...]
        if i < n_layers - 1:
            h = jnp.where(z > 0, z, neg_slope * z)
        else:
            # Masked softmax over the first n_valid columns (padded cols -> 0).
            col = jax.lax.broadcasted_iota(jnp.int32, z.shape, 1)
            z = jnp.where(col < n_valid, z, -jnp.inf)
            z = z - jnp.max(z, axis=-1, keepdims=True)
            e = jnp.exp(z)
            h = e * pl.reciprocal(jnp.sum(e, axis=-1, keepdims=True),
                                  approx=True)
    o_ref[...] = h.astype(o_ref.dtype)


def tail_mlp(x, tail_params, *, n_valid, neg_slope=_NEG_SLOPE):
    """x: (Bp, K0p) f32; tail_params: list of (w_bf16 (Kp,Np), b_f32 (1,Np))."""
    Bp = x.shape[0]
    n_layers = len(tail_params)
    ws = [w for w, _ in tail_params]
    bs = [b for _, b in tail_params]
    Np_last = ws[-1].shape[1]

    kernel = functools.partial(_tail_kernel, n_layers=n_layers,
                               neg_slope=neg_slope, n_valid=n_valid)
    in_specs = ([pl.BlockSpec(x.shape, lambda i: (0, 0))]
                + [pl.BlockSpec(w.shape, lambda i: (0, 0)) for w in ws]
                + [pl.BlockSpec(b.shape, lambda i: (0, 0)) for b in bs])
    return pl.pallas_call(
        kernel,
        out_shape=jax.ShapeDtypeStruct((Bp, Np_last), jnp.float32),
        grid_spec=pltpu.PrefetchScalarGridSpec(
            num_scalar_prefetch=0,
            grid=(1,),
            in_specs=in_specs,
            out_specs=pl.BlockSpec((Bp, Np_last), lambda i: (0, 0)),
        ),
        compiler_params=pltpu.CompilerParams(
            dimension_semantics=("arbitrary",),
            vmem_limit_bytes=_VMEM_LIMIT_BYTES),
    )(x, *ws, *bs)


# ----------------------------------------------------------------------------
# One-time parameter preparation (hoisted OUT of the forward pass).
# ----------------------------------------------------------------------------
def init_params(key, dims):
    """PyTorch-Linear-style init.  weight: (out, in), bias: (out,)."""
    params = []
    for fan_in, fan_out in zip(dims[:-1], dims[1:]):
        key, kw, kb = jax.random.split(key, 3)
        bound = 1.0 / jnp.sqrt(jnp.float32(fan_in))
        w = jax.random.uniform(kw, (fan_out, fan_in), jnp.float32, -bound, bound)
        b = jax.random.uniform(kb, (fan_out,), jnp.float32, -bound, bound)
        params.append((w, b))
    return params


def prepare_params(params, *, tail_vmem_budget=_TAIL_VMEM_BUDGET,
                   max_tile=_MAX_TILE):
    """Transpose to (in,out), zero-pad, cast weights to bf16 — once."""
    n = len(params)
    dims = [params[0][0].shape[1]] + [w.shape[0] for (w, _) in params]
    pdims = [_padded_dim(d, max_tile) for d in dims]

    # Longest trailing run of layers whose padded bf16 weights fit the budget.
    tail_start = n - 1
    acc_bytes = pdims[n - 1] * pdims[n] * 2
    while tail_start > 0:
        nxt = acc_bytes + pdims[tail_start - 1] * pdims[tail_start] * 2
        if nxt > tail_vmem_budget:
            break
        acc_bytes = nxt
        tail_start -= 1

    big, tail = [], []
    for i, (w, b) in enumerate(params):
        fan_out, fan_in = w.shape
        Kp, Np = pdims[i], pdims[i + 1]
        wT = jnp.zeros((Kp, Np), jnp.bfloat16)
        wT = wT.at[:fan_in, :fan_out].set(w.T.astype(jnp.bfloat16))
        bp = jnp.zeros((1, Np), jnp.float32).at[0, :fan_out].set(b)
        if i < tail_start:
            big.append((wT, bp, min(max_tile, Kp), min(max_tile, Np)))
        else:
            tail.append((wT, bp))

    return {
        "big": big,                     # [(w_bf16, b, tk, tn), ...] tiled layers
        "tail": tail,                   # [(w_bf16, b), ...] fused in VMEM
        "in_dim": dims[0],
        "in_dim_padded": pdims[0],
        "n_classes": dims[-1],
    }


# ----------------------------------------------------------------------------
# Forward pass (consumes the prepared plan only).
# ----------------------------------------------------------------------------
def rerank_finegrain_forward(x1, plan):
    """Pallas implementation of RerankFinegrainModelUVD.forward."""
    B = x1.shape[0]
    h = x1.reshape(B, -1).astype(jnp.float32)            # x1.view(B, -1)
    assert h.shape[1] == plan["in_dim"]

    Bp = _round_up(max(B, 16), 16)                       # 16-row pad (bf16 tiles)
    h = jnp.pad(h, ((0, Bp - B), (0, plan["in_dim_padded"] - h.shape[1])))

    for w_bf16, b, tk, tn in plan["big"]:
        h = dense_layer_tiled(h, w_bf16, b, tk=tk, tn=tn)

    h = tail_mlp(h, plan["tail"], n_valid=plan["n_classes"])
    return h[:B, :plan["n_classes"]]                     # (B, 2) softmax probs


# ----------------------------------------------------------------------------
# Pure-JAX references.
# ----------------------------------------------------------------------------
def reference_forward_matched(x1, plan):
    """Same numerics as the kernels (bf16 weights/inputs, f32 accumulation)."""
    B = x1.shape[0]
    h = x1.reshape(B, -1).astype(jnp.float32)
    h = jnp.pad(h, ((0, 0), (0, plan["in_dim_padded"] - h.shape[1])))
    layers = [(w, b) for (w, b, _, _) in plan["big"]] + list(plan["tail"])
    for i, (w, b) in enumerate(layers):
        z = jnp.dot(h.astype(jnp.bfloat16), w,
                    preferred_element_type=jnp.float32) + b
        if i < len(layers) - 1:
            h = jnp.where(z > 0, z, _NEG_SLOPE * z)
        else:
            h = jax.nn.softmax(z[:, :plan["n_classes"]], axis=-1)
    return h


def reference_forward_fp32(x1, params):
    """Original fp32 module semantics."""
    h = x1.reshape(x1.shape[0], -1).astype(jnp.float32)
    for i, (w, b) in enumerate(params):
        h = h @ w.T + b
        if i < len(params) - 1:
            h = jnp.where(h > 0, h, _NEG_SLOPE * h)      # LeakyReLU(0.01)
    return jax.nn.softmax(h, axis=1)


if __name__ == "__main__":
    # Layer widths = original module widths / 10 (see NOTE at top).
    DIMS = [4800, 3200, 1600, 1000, 200, 100, 50, 20, 10, 2]

    key = jax.random.PRNGKey(0)
    key, kp, kx = jax.random.split(key, 3)
    params = init_params(kp, DIMS)
    plan = prepare_params(params)          # one-time weight prep (bf16, padded)

    # Input mimics an NCHW tensor that flattens to DIMS[0] features:
    # (batch=2, C=3, H=40, W=40) -> view(2, 4800).
    x1 = jax.random.normal(kx, (2, 3, 40, 40), jnp.float32)

    out = jax.block_until_ready(rerank_finegrain_forward(x1, plan))
    assert out.shape == (2, 2)

    ref_matched = reference_forward_matched(x1, plan)
    ref_fp32 = reference_forward_fp32(x1, params)
    assert jnp.allclose(out, ref_matched, rtol=1e-2, atol=1e-2), (out, ref_matched)
    assert jnp.allclose(out, ref_fp32, rtol=3e-2, atol=3e-2), (out, ref_fp32)

    print("KERNEL_OK")
</pallas_src>

<mosaic_0001>
module attributes {stable_mosaic.version = 11 : i64} {
  func.func @_dense_kernel(%arg0: i32, %arg1: i32, %arg2: memref<10x16x512xf32, #tpu.memory_space<vmem>>, %arg3: memref<512x512xbf16, #tpu.memory_space<vmem>>, %arg4: memref<1x512xf32, #tpu.memory_space<vmem>>, %arg5: memref<16x512xf32, #tpu.memory_space<vmem>>) attributes {dimension_semantics = [#tpu.dimension_semantics<parallel>, #tpu.dimension_semantics<arbitrary>], iteration_bounds = array<i64: 7, 10>, scalar_prefetch = 0 : i64, scratch_operands = 0 : i64, tpu.core_type = #tpu.core_type<tc>, window_params = [{pipeline_mode = #tpu.pipeline_mode<synchronous>, transform_indices = @transform_0, window_bounds = array<i64: 10, 16, 512>}, {transform_indices = @transform_1, window_bounds = array<i64: 512, 512>}, {transform_indices = @transform_2, window_bounds = array<i64: 1, 512>}, {transform_indices = @transform_3, window_bounds = array<i64: 16, 512>}]} {
    %c0_i32 = arith.constant 0 : i32
    %0 = arith.cmpi eq, %arg1, %c0_i32 : i32
    %1 = arith.extui %0 : i1 to i32
    %c0_i32_0 = arith.constant 0 : i32
    %2 = arith.cmpi ne, %1, %c0_i32_0 : i32
    scf.if %2 {
      %cst_9 = arith.constant 0.000000e+00 : f32
      %15 = vector.broadcast %cst_9 : f32 to vector<16x512xf32>
      %c0_10 = arith.constant 0 : index
      %c0_11 = arith.constant 0 : index
      %16 = vector.load %arg5[%c0_10, %c0_11] : memref<16x512xf32, #tpu.memory_space<vmem>>, vector<16x512xf32>
      tpu.vector_store %arg5[%c0_10, %c0_11], %15 {strides = array<i32>} : memref<16x512xf32, #tpu.memory_space<vmem>>, vector<16x512xf32>,
    } else {
    }
    %3 = arith.index_cast %arg1 : i32 to index
    %c0 = arith.constant 0 : index
    %c0_1 = arith.constant 0 : index
    %4 = vector.load %arg2[%3, %c0, %c0_1] : memref<10x16x512xf32, #tpu.memory_space<vmem>>, vector<1x16x512xf32>
    %5 = vector.shape_cast %4 : vector<1x16x512xf32> to vector<16x512xf32>
    %6 = arith.truncf %5 : vector<16x512xf32> to vector<16x512xbf16>
    %c0_2 = arith.constant 0 : index
    %c0_3 = arith.constant 0 : index
    %7 = vector.load %arg5[%c0_2, %c0_3] : memref<16x512xf32, #tpu.memory_space<vmem>>, vector<16x512xf32>
    %c0_4 = arith.constant 0 : index
    %c0_5 = arith.constant 0 : index
    %8 = vector.load %arg3[%c0_4, %c0_5] : memref<512x512xbf16, #tpu.memory_space<vmem>>, vector<512x512xbf16>
    %cst = arith.constant dense<0.000000e+00> : vector<16x512xf32>
    %9 = tpu.matmul %6, %8, %cst {dimension_numbers = #tpu.dot_dimension_numbers<[1], [0], [0], [1], [0, 0, 1, 1], [], []>} : vector<16x512xbf16>, vector<512x512xbf16>, vector<16x512xf32> -> vector<16x512xf32>
    %10 = arith.addf %7, %9 : vector<16x512xf32>
    %c0_6 = arith.constant 0 : index
    %c0_7 = arith.constant 0 : index
    %11 = vector.load %arg5[%c0_6, %c0_7] : memref<16x512xf32, #tpu.memory_space<vmem>>, vector<16x512xf32>
    tpu.vector_store %arg5[%c0_6, %c0_7], %10 {strides = array<i32>} : memref<16x512xf32, #tpu.memory_space<vmem>>, vector<16x512xf32>,
    %c9_i32 = arith.constant 9 : i32
    %12 = arith.cmpi eq, %arg1, %c9_i32 : i32
    %13 = arith.extui %12 : i1 to i32
    %c0_i32_8 = arith.constant 0 : i32
    %14 = arith.cmpi ne, %13, %c0_i32_8 : i32
    scf.if %14 {
      %c0_9 = arith.constant 0 : index
      %c0_10 = arith.constant 0 : index
      %15 = vector.load %arg5[%c0_9, %c0_10] : memref<16x512xf32, #tpu.memory_space<vmem>>, vector<16x512xf32>
      %c0_11 = arith.constant 0 : index
      %c0_12 = arith.constant 0 : index
      %16 = vector.load %arg4[%c0_11, %c0_12] : memref<1x512xf32, #tpu.memory_space<vmem>>, vector<1x512xf32>
      %17 = vector.broadcast %16 : vector<1x512xf32> to vector<16x512xf32>
      %18 = arith.addf %15, %17 : vector<16x512xf32>
      %cst_13 = arith.constant 0.000000e+00 : f32
      %19 = vector.broadcast %cst_13 : f32 to vector<16x512xf32>
      %20 = arith.cmpf ogt, %18, %19 : vector<16x512xf32>
      %cst_14 = arith.constant 0.00999999977 : f32
      %21 = vector.broadcast %cst_14 : f32 to vector<16x512xf32>
      %22 = arith.mulf %21, %18 : vector<16x512xf32>
      %23 = arith.select %20, %18, %22 : vector<16x512xi1>, vector<16x512xf32>
      %c0_15 = arith.constant 0 : index
      %c0_16 = arith.constant 0 : index
      %24 = vector.load %arg5[%c0_15, %c0_16] : memref<16x512xf32, #tpu.memory_space<vmem>>, vector<16x512xf32>
      tpu.vector_store %arg5[%c0_15, %c0_16], %23 {strides = array<i32>} : memref<16x512xf32, #tpu.memory_space<vmem>>, vector<16x512xf32>,
    } else {
    }
    return
  }
  func.func @transform_0(%arg0: i32, %arg1: i32) -> (i32, i32, i32) {
    %c0_i32 = arith.constant 0 : i32
    %c0_i32_0 = arith.constant 0 : i32
    %c0_i32_1 = arith.constant 0 : i32
    %c0_i32_2 = arith.constant 0 : i32
    return %c0_i32, %c0_i32_0, %c0_i32_1 : i32, i32, i32
  }
  func.func @transform_1(%arg0: i32, %arg1: i32) -> (i32, i32) {
    %c0_i32 = arith.constant 0 : i32
    return %arg1, %arg0 : i32, i32
  }
  func.func @transform_2(%arg0: i32, %arg1: i32) -> (i32, i32) {
    %c0_i32 = arith.constant 0 : i32
    %c0_i32_0 = arith.constant 0 : i32
    return %c0_i32, %arg0 : i32, i32
  }
  func.func @transform_3(%arg0: i32, %arg1: i32) -> (i32, i32) {
    %c0_i32 = arith.constant 0 : i32
    %c0_i32_0 = arith.constant 0 : i32
    return %c0_i32, %arg0 : i32, i32
  }
}

</mosaic_0001>

<bundles_post_ra>
// kernel: tpu_custom_call.1
= control target key start
LH: loop header
LB: loop body
LE: loop exit
PB: predicated region body
PF: predicated region fallthrough
CT: control target
= control target key end

     0   :  { %s2650_s0 = inlined_call_operand.hbm [shape: f32[10,16,512], index: 0, kind: input, shape index: {}]   ;;  %s2651_s1 = inlined_call_operand.hbm [shape: bf16[5120,3584], index: 1, kind: input, shape index: {}]   ;;  %s2652_s2 = inlined_call_operand.hbm [shape: f32[1,3584], index: 2, kind: input, shape index: {}]   ;;  %s2653_s3 = inlined_call_operand.hbm [shape: f32[16,3584], index: 3, kind: output, shape index: {}]  }
   0x1   :  { %2661 = sst [smem:[#allocation16_spill]] %s2650_s0 }
   0x2   :  { %2662 = sst [smem:[#allocation17_spill]] %s2651_s1 }
   0x3   :  { %2663 = sst [smem:[#allocation18_spill]] %s2653_s3 }
   0x4   :  { %8 = vsyncpa [#allocation3], 0 }
   0x5   :  { %9 = vsyncpa [#allocation6], 0 }
   0x6   :  { %11 = vsyncpa [#allocation6 + $0x1], 0 }
   0x7   :  { %12 = vsyncpa [#allocation4], 0 }
   0x8   :  { %14 = vsyncpa [#allocation4 + $0x1], 0  ;;  %s2183_s12 = smov 0   ;;  %s2185_s13 = smov 0  }
   0x9   :  { %s2187_s14 = smov 0   ;;  %s2189_s15 = smov 0  }
   0xa   :  { %s2191_s16 = smov 0   ;;  %s2193_s17 = smov 0  }
   0xb   :  { %s2195_s18 = smov 0   ;;  %s2197_s19 = smov 0  }
   0xc   :  { %s2199_s20 = smov 0   ;;  %s2201_s21 = smov 0  }
   0xd   :  { %s2203_s22 = smov 0  }
   0xe LB: > { %2664 = sst [smem:[#allocation13_spill]] %s2136_s19  ;;  %s29_s23 = sadd.s32 1, %s2140_s20  ;;  %s2148_s22 = sphi %s2203_s22, %s20_s22   ;;  %s2144_s21 = sphi %s2201_s21, %s2698_s21   ;;  %s2140_s20 = sphi %s2199_s20, %s2697_s20   ;;  %s2136_s19 = sphi %s2197_s19, %s2696_s19   ;;  %s2132_s18 = sphi %s2195_s18, %s2695_s18   ;;  %s2128_s17 = sphi %s2193_s17, %s2694_s17   ;;  %s2124_s16 = sphi %s2191_s16, %s2693_s16   ;;  %s2120_s15 = sphi %s2189_s15, %s2692_s15   ;;  %s2116_s14 = sphi %s2187_s14, %s2691_s14   ;;  %s2112_s13 = sphi %s2185_s13, %s2690_s13   ;;  %s2108_s12 = sphi %s2183_s12, %s2689_s12  }
   0xf   : > { %s32_s24 = sadd.s32 1, %s2144_s21  ;;  %p30_p0 = scmp.ge.s32.totalorder %s29_s23, 10 }
  0x10   : > { %s62_s25 = sadd.s32 1, %s2128_s17  ;;  %p69_p1 = scmp.ne.s32.totalorder %s2128_s17, %s2124_s16 }
  0x11   : > { %p2658_p2 = scmp.eq.s32.totalorder %s2148_s22, 0  ;;  %s2700_s23 = smov (%p30_p0, %s29_s23), 0 }
  0x12   : > { %2665 = sst [smem:[#allocation14_spill]] %s2700_s23  ;;  %s2702_s24 = smov (!%p30_p0, %s32_s24), %s2144_s21 }
  0x13   : > { %s57_s26 = ssub.s32 %s2140_s20, %s2700_s23  ;;  %p2251_p3 = por %p2658_p2, %p69_p1 }
  0x14   : > { %p34_p4 = scmp.ge.s32.totalorder %s2702_s24, 7  ;;  %p2657_p5 = scmp.lt.s32.totalorder %s2148_s22, 70 }
  0x15   : > { %s164_s28 = sand.u32 1, %s2148_s22   ;;  %s166_s29 = sand.u32 1, %s2128_s17  }
  0x16   : > { %s2704_s24 = smov (%p34_p4, %s2702_s24), 0  ;;  %s1465_s4 = sshll.u32 %s166_s29, 10 }
  0x17   : > { %2667 = sst [smem:[#allocation15_spill]] %s2704_s24  ;;  %s2262_s30 = ssub.s32 %s2144_s21, %s2704_s24 }
  0x18   : > { %s59_s5 = sor.u32 %s2262_s30, %s57_s26  ;;  %s1467_s6 = sshll.u32 %s2144_s21, 2 }
  0x19   : > { %p60_p6 = scmp.eq.s32.totalorder %s59_s5, 0  ;;  %s1618_s7 = smul.u32 1792, %s2140_s20 }
  0x1a   : > { %s168_s8 = scalar_lea.vmem [#allocation5], %s1465_s4  ;;  %p2274_p7 = pnand %p2657_p5, %p2251_p3 }
  0x1b   : > { %s178_s9 = sshll.u32 %s168_s8, 4  ;;  %s175_s11 = sadd.s32 %s1618_s7, %s1467_s6  ;;  %s179_s9 = int_to_ptr.vmem [resolvable:$true] %s178_s9 }
  0x1c   : > { %s2268_s10 = scalar_select %p60_p6, %s2128_s17, %s62_s25  }
  0x1d   : > { %s1469_s23 = sshll.u32 %s175_s11, 6  ;;  %s2669_s1 = sld [smem:[#allocation17_spill]] }
  0x1e   : > { %s2281_s29 = scalar_lea.sflag [#allocation6], %s164_s28  ;;  %p1940_p8 = pneg %p2274_p7 }
  0x1f   : > { %s1951_s25 = scalar_lea.vmem %s179_s9, 16384  ;;  %s2150_s4 = smov [#allocation5]  }
  0x20   : > { %p1952_p9 = scmp.ne.s32.totalorder %s179_s9, %s1951_s25  ;;  %s1956_s27 = sshll.u32 %s2150_s4, 4  ;;  %s1957_s27 = int_to_ptr.vmem [resolvable:$false] %s1956_s27 }
  0x21   : > { %s1958_s5 = scalar_lea.vmem %s1957_s27, 32768  ;;  %p1959_p12 = scmp.lt.s32.totalorder %s179_s9, %s1957_s27 }
  0x22   : > { %p1954_p10 = pnand %p1952_p9, %p1940_p8  ;;  %p1960_p13 = scmp.lt.s32.totalorder %s1958_s5, %s1951_s25 }
  0x23   : > { %s177_s26 = scalar_lea.hbm %s2669_s1, %s1469_s23 }
  0x24   : > { %p1955_p11 = pneg %p1954_p10  ;;  %p1961_p0 = por %p1960_p13, %p1959_p12 }
  0x26   : > { %p1962_p1 = pnand %p1961_p0, %p1955_p11 }
  0x28   : > { %1965 = shalt.err (!%p1962_p1)
}
  0x29   : > { %s2151_s19 = smov 1792   ;;  %s2152_s23 = smov 256  }
  0x2a   : > { %s2153_s24 = smov 16   ;;  %s2289_s28 = sadd.s32 4294967295, %s2148_s22  }
  0x2b   : > { %1636 = dma.hbm_to_vmem [thread:$0]  (!%p2274_p7), %s177_s26, 16384, %s179_s9, %s2281_s29, %s2151_s19, %s2152_s23, %s2153_s24  }
  0x2c   : > { %p75_p3 = scmp.ne.s32.totalorder %s2124_s16, %s2120_s15  ;;  %p2659_p4 = scmp.eq.s32.totalorder %s2289_s28, 0 }
  0x2d   : > { %p1462_p8 = scmp.ge.s32.totalorder %s2148_s22, 1  ;;  %p138_p10 = scmp.lt.s32.totalorder %s2148_s22, 71 }
  0x2e   : > { %p2298_p9 = por %p2659_p4, %p75_p3  ;;  %s2154_s3 = smov [#allocation2]  }
  0x2f   : > { %p2303_p11 = pnand %p1462_p8, %p138_p10  ;;  %s150_s8 = sshll.u32 %s2154_s3, 4  ;;  %s151_s8 = int_to_ptr.vmem [resolvable:$true] %s150_s8 }
  0x30   : > { %s1977_s15 = scalar_lea.vmem %s151_s8, 10240  ;;  %p1985_p5 = scmp.lt.s32.totalorder %s151_s8, %s151_s8 }
  0x31   : > { %p1629_p7 = pneg %p2303_p11  ;;  %p1978_p0 = scmp.ne.s32.totalorder %s151_s8, %s1977_s15 }
  0x32   : > { %p1986_p6 = scmp.lt.s32.totalorder %s1977_s15, %s1977_s15 }
  0x33   : > { %p1630_p12 = pnand %p1629_p7, %p2659_p4 }
  0x34   : > { %p1987_p2 = por %p1986_p6, %p1985_p5 }
  0x35   : > { %p1968_p13 = pneg %p1630_p12 }
  0x37   : > { %p1980_p1 = pnand %p1978_p0, %p1968_p13 }
  0x39   : > { %p1981_p3 = pneg %p1980_p1 }
  0x3b   : > { %p1988_p8 = pnand %p1987_p2, %p1981_p3 }
  0x3d   : > { %1991 = shalt.err (!%p1988_p8)
}
  0x3e   : > { %s2155_s9 = smov 512   ;;  %s2156_s11 = smov 32  }
  0x3f   : > { %s2672_s0 = sld [smem:[#allocation16_spill]]  ;;  %s1461_s4 = sadd.s32 4294967294, %s2148_s22  }
  0x40   : > { %p86_p2 = scmp.eq.s32.totalorder %s2262_s30, 0  ;;  %s88_s27 = sadd.s32 1, %s2116_s14 }
  0x41   : > { %p95_p5 = scmp.ne.s32.totalorder %s2116_s14, %s2112_s13  ;;  %p2673_p6 = scmp.eq.s32.totalorder %s2148_s22, 0 }
  0x42   : > { %s2320_s5 = scalar_select %p86_p2, %s2116_s14, %s88_s27  }
  0x43   : > { %p2324_p10 = por %p95_p5, %p2673_p6  ;;  %p101_p7 = scmp.ne.s32.totalorder %s2112_s13, %s2108_s12 }
  0x44   : > { %p2675_p13 = scmp.eq.s32.totalorder %s2289_s28, 69  ;;  %s190_s24 = sand.u32 1, %s2116_s14  }
  0x45   : > { %1632 = dma.hbm_to_vmem [thread:$0]  (!%p1630_p12), %s2672_s0, 10240, %s151_s8, [#allocation3], %s2155_s9, %s2155_s9, %s2156_s11  }
  0x46   : > { %p2332_p0 = por %p2675_p13, %p95_p5  ;;  %p131_p12 = scmp.eq.s32.totalorder %s1461_s4, 69 }
  0x47   : > { %p2338_p1 = por %p101_p7, %p2659_p4  ;;  %s1470_s8 = sshll.u32 %s190_s24, 2 }
  0x48   : > { %s2676_s23 = scalar_select %p2332_p0, 1, 0 }
  0x49   : > { %p2343_p3 = por %p131_p12, %p101_p7  ;;  %s1615_s15 = sshll.u32 %s2144_s21, 6 }
  0x4a   : > { %s198_s26 = scalar_lea.hbm %s2652_s2, %s1615_s15  ;;  %s192_s25 = scalar_lea.vmem [#allocation7], %s1470_s8 }
  0x4b   : > { %s2678_s3 = scalar_select %p2343_p3, 1, 0 }
  0x4c   : > { %s200_s27 = sshll.u32 %s192_s25, 4  ;;  %p2679_p8 = scmp.lt.s32.totalorder %s2148_s22, 70  ;;  %s201_s27 = int_to_ptr.vmem [resolvable:$true] %s200_s27 }
  0x4d   : > { %s2005_s0 = scalar_lea.vmem %s201_s27, 64  ;;  %s2157_s24 = smov [#allocation7]  }
  0x4e   : > { %p2355_p2 = pnand %p2679_p8, %p2324_p10  ;;  %p2006_p6 = scmp.ne.s32.totalorder %s201_s27, %s2005_s0 }
  0x4f   : > { %s2010_s1 = sshll.u32 %s2157_s24, 4  ;;  %s2011_s1 = int_to_ptr.vmem [resolvable:$false] %s2010_s1 }
  0x50   : > { %p1994_p5 = pneg %p2355_p2  ;;  %s2012_s15 = scalar_lea.vmem %s2011_s1, 128 }
  0x51   : > { %p2013_p12 = scmp.lt.s32.totalorder %s201_s27, %s2011_s1  ;;  %p2014_p4 = scmp.lt.s32.totalorder %s2012_s15, %s2005_s0 }
  0x52   : > { %p2008_p7 = pnand %p2006_p6, %p1994_p5 }
  0x53   : > { %p2015_p3 = por %p2014_p4, %p2013_p12 }
  0x54   : > { %p2009_p13 = pneg %p2008_p7 }
  0x56   : > { %p2016_p0 = pnand %p2015_p3, %p2009_p13 }
  0x58   : > { %2019 = shalt.err (!%p2016_p0)
}
  0x59   : > { %1639 = dma.hbm_to_vmem [thread:$0]  (!%p2355_p2), %s198_s26, 64, %s201_s27, %s2281_s29  }
  0x5a   : > { %209 = sbr.rel (%p2303_p11) target bundleno = 497 (0x1f1), region = 32  ;;  %p2681_p10 = scmp.eq.s32.totalorder (!%p2303_p11), %s2289_s28, 0 }
  0x5f   : > { %2091 = dma.done.wait (%p2681_p10), [#allocation3], 10240   ;;  %p2682_p8 = pmov %p2681_p10 }
  0x60   : > { %s215_s0 = sand.u32 1, %s2289_s28   ;;  %s217_s1 = sand.u32 1, %s2124_s16  }
  0x61   : > { %2093 = vsyncadd (%p2682_p8), [#allocation3], 4294957056  ;;  %s1475_s19 = sshll.u32 %s217_s1, 10  ;;  %s216_s8 = scalar_lea.sflag [#allocation6], %s215_s0 }
  0x62   : > { %s2372_s9 = scalar_lea.vmem [#allocation5], %s1475_s19 }
  0x63   : > { %2095 = dma.done.wait (%p2298_p9), %s216_s8, 16384  }
  0x64   : > { %2097 = vsyncadd (%p2298_p9), %s216_s8, 4294950912  ;;  %s2379_s29 = sand.u32 1, %s2112_s13  }
  0x65   : > { %s1476_s7 = sshll.u32 %s2379_s29, 2 }
  0x66   : > { %s2382_s11 = scalar_lea.vmem [#allocation7], %s1476_s7 }
  0x67   : > { %2099 = dma.done.wait (%p2338_p1), %s216_s8, 64  }
  0x68   : > { %2101 = vsyncadd (%p2338_p1), %s216_s8, 4294967232  ;;  %s1477_s28 = sshll.u32 %s2379_s29, 6  ;;  %p1478_p4 = scmp.ne.s32.totalorder %s2132_s18, 0 }
  0x69   : > { %s2389_s26 = scalar_lea.vmem [#allocation8], %s1477_s28 }
  0x6a   : > { %263 = sbr.rel (%p1478_p4) target bundleno = 116 (0x74), region = 48 }
  0x6f   : > { %v2158_v0 = vmov 0.0  }
  0x70   : > { %264 = vst [vmem:[%s2389_s26] sm:$0xff] %v2158_v0  ;;  %265 = vst [vmem:[%s2389_s26 + $0x8] sm:$0xff] %v2158_v0 }
  0x71   : > { %266 = vst [vmem:[%s2389_s26 + $0x10] sm:$0xff] %v2158_v0  ;;  %267 = vst [vmem:[%s2389_s26 + $0x18] sm:$0xff] %v2158_v0 }
  0x72   : > { %268 = vst [vmem:[%s2389_s26 + $0x20] sm:$0xff] %v2158_v0  ;;  %269 = vst [vmem:[%s2389_s26 + $0x28] sm:$0xff] %v2158_v0 }
  0x73   : > { %270 = vst [vmem:[%s2389_s26 + $0x30] sm:$0xff] %v2158_v0  ;;  %271 = vst [vmem:[%s2389_s26 + $0x38] sm:$0xff] %v2158_v0 }
  0x74 PF: > { %v1746_v1 = vld [vmem:[%s2372_s9 + $0xe4] ss:$16 sps:$4 sm:$0xff]   ;;  %v1750_v3 = vld [vmem:[%s2372_s9 + $0xe0] ss:$16 sps:$4 sm:$0xff]   ;;  %s1616_s6 = sshll.u32 %s2132_s18, 6  ;;  %p1609_p9 = scmp.ne.s32.totalorder %s2132_s18, 9 }
  0x75   : > { %v1748_v2 = vld [vmem:[%s2372_s9 + $0x2e4] ss:$16 sps:$4 sm:$0xff]   ;;  %1063 = vmatprep.subr.bf16.mxu0 %v1746_v1  ;;  %v1751_v4 = vld [vmem:[%s2372_s9 + $0x2e0] ss:$16 sps:$4 sm:$0xff]   ;;  %s2447_s30 = scalar_lea.vmem [#allocation2], %s1616_s6 }
  0x76   : > { %1106 = vmatprep.subr.bf16.mxu1 %v1748_v2  ;;  %v1752_v5 = vld [vmem:[%s2372_s9 + $0xc4] ss:$16 sps:$4 sm:$0xff]   ;;  %1064 = vmatpush1.bf16.msra.mxu0 %v1750_v3  ;;  %v1756_v7 = vld [vmem:[%s2372_s9 + $0xc0] ss:$16 sps:$4 sm:$0xff]   ;;  %v276_v47 = vld [vmem:[%s2447_s30 + $0x8] sm:$0xff] }
  0x77   : > { %1107 = vmatpush1.bf16.msra.mxu1 %v1751_v4  ;;  %v1754_v6 = vld [vmem:[%s2372_s9 + $0x2c4] ss:$16 sps:$4 sm:$0xff]   ;;  %1065 = vmatprep.subr.bf16.mxu0 %v1752_v5  ;;  %v1757_v8 = vld [vmem:[%s2372_s9 + $0x2c0] ss:$16 sps:$4 sm:$0xff]   ;;  %v280_v48 = vld [vmem:[%s2447_s30 + $0x28] sm:$0xff] }
  0x78   : > { %1108 = vmatprep.subr.bf16.mxu1 %v1754_v6  ;;  %v1758_v9 = vld [vmem:[%s2372_s9 + $0xa4] ss:$16 sps:$4 sm:$0xff]   ;;  %v1762_v11 = vld [vmem:[%s2372_s9 + $0xa0] ss:$16 sps:$4 sm:$0xff]   ;;  %v278_v49 = vld [vmem:[%s2447_s30 + $0x18] sm:$0xff]  ;;  %v284_v54 = vpack.c.bf16 %v280_v48, %v276_v47 }
  0x79   : > { %v1760_v10 = vld [vmem:[%s2372_s9 + $0x2a4] ss:$16 sps:$4 sm:$0xff]   ;;  %v1763_v12 = vld [vmem:[%s2372_s9 + $0x2a0] ss:$16 sps:$4 sm:$0xff]   ;;  %v282_v50 = vld [vmem:[%s2447_s30 + $0x38] sm:$0xff] }
  0x7a   : > { %1066 = vmatpush1.bf16.msra.mxu0 %v1756_v7  ;;  %v1764_v13 = vld [vmem:[%s2372_s9 + $0x84] ss:$16 sps:$4 sm:$0xff]   ;;  %v1768_v15 = vld [vmem:[%s2372_s9 + $0x80] ss:$16 sps:$4 sm:$0xff]   ;;  %v286_v55 = vpack.c.bf16 %v282_v50, %v278_v49  ;;  %1095 = vmatprep.mubr.bf16.mxu0 %v284_v54  ;;  %v1890_v47 = vld [vmem:[%s2372_s9 + $0x1e8] ss:$16 sps:$4 sm:$0xff]  }
  0x7b   : > { %1109 = vmatpush1.bf16.msra.mxu1 %v1757_v8  ;;  %1067 = vmatprep.subr.bf16.mxu0 %v1758_v9  ;;  %v1766_v14 = vld [vmem:[%s2372_s9 + $0x284] ss:$16 sps:$4 sm:$0xff]   ;;  %v1769_v16 = vld [vmem:[%s2372_s9 + $0x280] ss:$16 sps:$4 sm:$0xff]   ;;  %v1893_v48 = vld [vmem:[%s2372_s9 + $0x3e8] ss:$16 sps:$4 sm:$0xff]  }
  0x7c   : > { %1110 = vmatprep.subr.bf16.mxu1 %v1760_v10  ;;  %v1770_v17 = vld [vmem:[%s2372_s9 + $0x64] ss:$16 sps:$4 sm:$0xff]   ;;  %v1774_v19 = vld [vmem:[%s2372_s9 + $0x60] ss:$16 sps:$4 sm:$0xff]   ;;  %1138 = vmatprep.mubr.bf16.mxu1 %v286_v55  ;;  %v1898_v49 = vld [vmem:[%s2372_s9 + $0x1cc] ss:$16 sps:$4 sm:$0xff]  }
  0x7d   : > { %v1772_v18 = vld [vmem:[%s2372_s9 + $0x264] ss:$16 sps:$4 sm:$0xff]   ;;  %v1775_v20 = vld [vmem:[%s2372_s9 + $0x260] ss:$16 sps:$4 sm:$0xff]   ;;  %v1901_v50 = vld [vmem:[%s2372_s9 + $0x3cc] ss:$16 sps:$4 sm:$0xff]  }
  0x7e   : > { %1068 = vmatpush1.bf16.msra.mxu0 %v1762_v11  ;;  %v1776_v21 = vld [vmem:[%s2372_s9 + $0x44] ss:$16 sps:$4 sm:$0xff]   ;;  %v1780_v23 = vld [vmem:[%s2372_s9 + $0x40] ss:$16 sps:$4 sm:$0xff]   ;;  %v1844_v11 = vld [vmem:[%s2372_s9 + $0xec] ss:$16 sps:$4 sm:$0xff]  }
  0x7f   : > { %1111 = vmatpush1.bf16.msra.mxu1 %v1763_v12  ;;  %1069 = vmatprep.subr.bf16.mxu0 %v1764_v13  ;;  %v1778_v22 = vld [vmem:[%s2372_s9 + $0x244] ss:$16 sps:$4 sm:$0xff]   ;;  %v1781_v24 = vld [vmem:[%s2372_s9 + $0x240] ss:$16 sps:$4 sm:$0xff]   ;;  %v1847_v12 = vld [vmem:[%s2372_s9 + $0x2ec] ss:$16 sps:$4 sm:$0xff]  }
  0x80   : > { %1112 = vmatprep.subr.bf16.mxu1 %v1766_v14  ;;  %v1782_v25 = vld [vmem:[%s2372_s9 + $0x24] ss:$16 sps:$4 sm:$0xff]   ;;  %v1786_v27 = vld [vmem:[%s2372_s9 + $0x20] ss:$16 sps:$4 sm:$0xff]  }
  0x81   : > { %v1784_v26 = vld [vmem:[%s2372_s9 + $0x224] ss:$16 sps:$4 sm:$0xff]   ;;  %v1787_v28 = vld [vmem:[%s2372_s9 + $0x220] ss:$16 sps:$4 sm:$0xff]  }
  0x82   : > { %1070 = vmatpush1.bf16.msra.mxu0 %v1768_v15  ;;  %v1788_v29 = vld [vmem:[%s2372_s9 + $0x4] ss:$16 sps:$4 sm:$0xff]   ;;  %v1792_v31 = vld [vmem:[%s2372_s9] ss:$16 sps:$4 sm:$0xff]   ;;  %v1842_v15 = vld [vmem:[%s2372_s9 + $0xe8] ss:$16 sps:$4 sm:$0xff]  }
  0x83   : > { %1113 = vmatpush1.bf16.msra.mxu1 %v1769_v16  ;;  %1071 = vmatprep.subr.bf16.mxu0 %v1770_v17  ;;  %v1790_v30 = vld [vmem:[%s2372_s9 + $0x204] ss:$16 sps:$4 sm:$0xff]   ;;  %v1793_v32 = vld [vmem:[%s2372_s9 + $0x200] ss:$16 sps:$4 sm:$0xff]   ;;  %v1845_v16 = vld [vmem:[%s2372_s9 + $0x2e8] ss:$16 sps:$4 sm:$0xff]  }
  0x84   : > { %1114 = vmatprep.subr.bf16.mxu1 %v1772_v18  ;;  %v1794_v33 = vld [vmem:[%s2372_s9 + $0x1e4] ss:$16 sps:$4 sm:$0xff]   ;;  %v1798_v35 = vld [vmem:[%s2372_s9 + $0x1e0] ss:$16 sps:$4 sm:$0xff]   ;;  %v1850_v17 = vld [vmem:[%s2372_s9 + $0xcc] ss:$16 sps:$4 sm:$0xff]  }
  0x85   : > { %v1796_v34 = vld [vmem:[%s2372_s9 + $0x3e4] ss:$16 sps:$4 sm:$0xff]   ;;  %v1799_v36 = vld [vmem:[%s2372_s9 + $0x3e0] ss:$16 sps:$4 sm:$0xff]   ;;  %v1853_v18 = vld [vmem:[%s2372_s9 + $0x2cc] ss:$16 sps:$4 sm:$0xff]  }
  0x86   : > { %1072 = vmatpush1.bf16.msra.mxu0 %v1774_v19  ;;  %v1800_v37 = vld [vmem:[%s2372_s9 + $0x1c4] ss:$16 sps:$4 sm:$0xff]   ;;  %v1804_v39 = vld [vmem:[%s2372_s9 + $0x1c0] ss:$16 sps:$4 sm:$0xff]   ;;  %v1848_v19 = vld [vmem:[%s2372_s9 + $0xc8] ss:$16 sps:$4 sm:$0xff]  }
  0x87   : > { %1115 = vmatpush1.bf16.msra.mxu1 %v1775_v20  ;;  %1073 = vmatprep.subr.bf16.mxu0 %v1776_v21  ;;  %v1802_v38 = vld [vmem:[%s2372_s9 + $0x3c4] ss:$16 sps:$4 sm:$0xff]   ;;  %v1805_v40 = vld [vmem:[%s2372_s9 + $0x3c0] ss:$16 sps:$4 sm:$0xff]   ;;  %v1851_v20 = vld [vmem:[%s2372_s9 + $0x2c8] ss:$16 sps:$4 sm:$0xff]  }
  0x88   : > { %1116 = vmatprep.subr.bf16.mxu1 %v1778_v22  ;;  %v1806_v41 = vld [vmem:[%s2372_s9 + $0x1a4] ss:$16 sps:$4 sm:$0xff]   ;;  %v1810_v43 = vld [vmem:[%s2372_s9 + $0x1a0] ss:$16 sps:$4 sm:$0xff]   ;;  %v1856_v21 = vld [vmem:[%s2372_s9 + $0xac] ss:$16 sps:$4 sm:$0xff]  }
  0x89   : > { %v1808_v42 = vld [vmem:[%s2372_s9 + $0x3a4] ss:$16 sps:$4 sm:$0xff]   ;;  %v1811_v44 = vld [vmem:[%s2372_s9 + $0x3a0] ss:$16 sps:$4 sm:$0xff]   ;;  %v1859_v22 = vld [vmem:[%s2372_s9 + $0x2ac] ss:$16 sps:$4 sm:$0xff]  }
  0x8a   : > { %1074 = vmatpush1.bf16.msra.mxu0 %v1780_v23  ;;  %v1812_v45 = vld [vmem:[%s2372_s9 + $0x184] ss:$16 sps:$4 sm:$0xff]   ;;  %v1816_v51 = vld [vmem:[%s2372_s9 + $0x180] ss:$16 sps:$4 sm:$0xff]   ;;  %v1854_v23 = vld [vmem:[%s2372_s9 + $0xa8] ss:$16 sps:$4 sm:$0xff]  }
  0x8b   : > { %1117 = vmatpush1.bf16.msra.mxu1 %v1781_v24  ;;  %1075 = vmatprep.subr.bf16.mxu0 %v1782_v25  ;;  %v1814_v46 = vld [vmem:[%s2372_s9 + $0x384] ss:$16 sps:$4 sm:$0xff]   ;;  %v1817_v52 = vld [vmem:[%s2372_s9 + $0x380] ss:$16 sps:$4 sm:$0xff]   ;;  %v1857_v24 = vld [vmem:[%s2372_s9 + $0x2a8] ss:$16 sps:$4 sm:$0xff]  }
  0x8c   : > { %1118 = vmatprep.subr.bf16.mxu1 %v1784_v26  ;;  %v1818_v53 = vld [vmem:[%s2372_s9 + $0x164] ss:$16 sps:$4 sm:$0xff]   ;;  %v1822_v57 = vld [vmem:[%s2372_s9 + $0x160] ss:$16 sps:$4 sm:$0xff]   ;;  %v1862_v25 = vld [vmem:[%s2372_s9 + $0x8c] ss:$16 sps:$4 sm:$0xff]  }
  0x8d   : > { %v1820_v56 = vld [vmem:[%s2372_s9 + $0x364] ss:$16 sps:$4 sm:$0xff]   ;;  %v1823_v58 = vld [vmem:[%s2372_s9 + $0x360] ss:$16 sps:$4 sm:$0xff]   ;;  %v1865_v26 = vld [vmem:[%s2372_s9 + $0x28c] ss:$16 sps:$4 sm:$0xff]  }
  0x8e   : > { %1076 = vmatpush1.bf16.msra.mxu0 %v1786_v27  ;;  %v1824_v59 = vld [vmem:[%s2372_s9 + $0x144] ss:$16 sps:$4 sm:$0xff]   ;;  %v1828_v61 = vld [vmem:[%s2372_s9 + $0x140] ss:$16 sps:$4 sm:$0xff]   ;;  %v1860_v27 = vld [vmem:[%s2372_s9 + $0x88] ss:$16 sps:$4 sm:$0xff]  }
  0x8f   : > { %1119 = vmatpush1.bf16.msra.mxu1 %v1787_v28  ;;  %1077 = vmatprep.subr.bf16.mxu0 %v1788_v29  ;;  %v1826_v60 = vld [vmem:[%s2372_s9 + $0x344] ss:$16 sps:$4 sm:$0xff]   ;;  %v1829_v62 = vld [vmem:[%s2372_s9 + $0x340] ss:$16 sps:$4 sm:$0xff]   ;;  %v1863_v28 = vld [vmem:[%s2372_s9 + $0x288] ss:$16 sps:$4 sm:$0xff]  }
  0x90   : > { %1120 = vmatprep.subr.bf16.mxu1 %v1790_v30  ;;  %v1830_v63 = vld [vmem:[%s2372_s9 + $0x124] ss:$16 sps:$4 sm:$0xff]   ;;  %v1834_v1 = vld [vmem:[%s2372_s9 + $0x120] ss:$16 sps:$4 sm:$0xff]   ;;  %v1868_v29 = vld [vmem:[%s2372_s9 + $0x6c] ss:$16 sps:$4 sm:$0xff]  }
  0x91   : > { %v1832_v0 = vld [vmem:[%s2372_s9 + $0x324] ss:$16 sps:$4 sm:$0xff]   ;;  %v1835_v2 = vld [vmem:[%s2372_s9 + $0x320] ss:$16 sps:$4 sm:$0xff]   ;;  %v1871_v30 = vld [vmem:[%s2372_s9 + $0x26c] ss:$16 sps:$4 sm:$0xff]  }
  0x92   : > { %1078 = vmatpush1.bf16.msra.mxu0 %v1792_v31  ;;  %v1836_v3 = vld [vmem:[%s2372_s9 + $0x104] ss:$16 sps:$4 sm:$0xff]   ;;  %v1840_v5 = vld [vmem:[%s2372_s9 + $0x100] ss:$16 sps:$4 sm:$0xff]   ;;  %v1866_v31 = vld [vmem:[%s2372_s9 + $0x68] ss:$16 sps:$4 sm:$0xff]  }
  0x93   : > { %1121 = vmatpush1.bf16.msra.mxu1 %v1793_v32  ;;  %1079 = vmatprep.subr.bf16.mxu0 %v1794_v33  ;;  %v1838_v4 = vld [vmem:[%s2372_s9 + $0x304] ss:$16 sps:$4 sm:$0xff]   ;;  %v1841_v6 = vld [vmem:[%s2372_s9 + $0x300] ss:$16 sps:$4 sm:$0xff]   ;;  %v1869_v32 = vld [vmem:[%s2372_s9 + $0x268] ss:$16 sps:$4 sm:$0xff]  }
  0x94   : > { %1122 = vmatprep.subr.bf16.mxu1 %v1796_v34  ;;  %v275_v7 = vld [vmem:[%s2447_s30] sm:$0xff]  ;;  %v277_v9 = vld [vmem:[%s2447_s30 + $0x10] sm:$0xff]  ;;  %v1874_v33 = vld [vmem:[%s2372_s9 + $0x4c] ss:$16 sps:$4 sm:$0xff]  }
  0x95   : > { %v279_v8 = vld [vmem:[%s2447_s30 + $0x20] sm:$0xff]  ;;  %v281_v10 = vld [vmem:[%s2447_s30 + $0x30] sm:$0xff]  ;;  %v1877_v34 = vld [vmem:[%s2372_s9 + $0x24c] ss:$16 sps:$4 sm:$0xff]  }
  0x96   : > { %1080 = vmatpush2.bf16.msra.mxu0 %v1798_v35  ;;  %v2477_v13 = vpack.c.bf16 %v279_v8, %v275_v7  ;;  %v2479_v14 = vpack.c.bf16 %v281_v10, %v277_v9  ;;  %v1872_v35 = vld [vmem:[%s2372_s9 + $0x48] ss:$16 sps:$4 sm:$0xff]   ;;  %v1934_v9 = vld [vmem:[%s2372_s9 + $0x10c] ss:$16 sps:$4 sm:$0xff]  }
  0x97   : > { %1123 = vmatpush2.bf16.msra.mxu1 %v1799_v36  ;;  %1081 = vmatprep.subr.bf16.mxu0 %v1800_v37  ;;  %v1875_v36 = vld [vmem:[%s2372_s9 + $0x248] ss:$16 sps:$4 sm:$0xff]   ;;  %v1880_v37 = vld [vmem:[%s2372_s9 + $0x2c] ss:$16 sps:$4 sm:$0xff]  }
  0x98   : > { %1124 = vmatprep.subr.bf16.mxu1 %v1802_v38  ;;  %v1883_v38 = vld [vmem:[%s2372_s9 + $0x22c] ss:$16 sps:$4 sm:$0xff]   ;;  %v1926_v7 = vld [vmem:[%s2372_s9 + $0x128] ss:$16 sps:$4 sm:$0xff]  }
  0x99   : > { %v1929_v8 = vld [vmem:[%s2372_s9 + $0x328] ss:$16 sps:$4 sm:$0xff]   ;;  %v1937_v10 = vld [vmem:[%s2372_s9 + $0x30c] ss:$16 sps:$4 sm:$0xff]  }
  0x9a   : > { %1082 = vmatpush2.bf16.msra.mxu0 %v1804_v39  ;;  %v1878_v39 = vld [vmem:[%s2372_s9 + $0x28] ss:$16 sps:$4 sm:$0xff]  }
  0x9b   : > { %1125 = vmatpush2.bf16.msra.mxu1 %v1805_v40  ;;  %1083 = vmatprep.subr.bf16.mxu0 %v1806_v41  ;;  %v1881_v40 = vld [vmem:[%s2372_s9 + $0x228] ss:$16 sps:$4 sm:$0xff]   ;;  %v1886_v41 = vld [vmem:[%s2372_s9 + $0xc] ss:$16 sps:$4 sm:$0xff]  }
  0x9c   : > { %1126 = vmatprep.subr.bf16.mxu1 %v1808_v42  ;;  %v1889_v42 = vld [vmem:[%s2372_s9 + $0x20c] ss:$16 sps:$4 sm:$0xff]  }
  0x9e   : > { %1084 = vmatpush2.bf16.msra.mxu0 %v1810_v43  ;;  %v1884_v43 = vld [vmem:[%s2372_s9 + $0x8] ss:$16 sps:$4 sm:$0xff]  }
  0x9f   : > { %1127 = vmatpush2.bf16.msra.mxu1 %v1811_v44  ;;  %1085 = vmatprep.subr.bf16.mxu0 %v1812_v45  ;;  %v1887_v44 = vld [vmem:[%s2372_s9 + $0x208] ss:$16 sps:$4 sm:$0xff]   ;;  %v1892_v45 = vld [vmem:[%s2372_s9 + $0x1ec] ss:$16 sps:$4 sm:$0xff]  }
  0xa0   : > { %1128 = vmatprep.subr.bf16.mxu1 %v1814_v46  ;;  %v1895_v46 = vld [vmem:[%s2372_s9 + $0x3ec] ss:$16 sps:$4 sm:$0xff]  }
  0xa2   : > { %1086 = vmatpush2.bf16.msra.mxu0 %v1816_v51  ;;  %v1896_v51 = vld [vmem:[%s2372_s9 + $0x1c8] ss:$16 sps:$4 sm:$0xff]  }
  0xa3   : > { %1129 = vmatpush2.bf16.msra.mxu1 %v1817_v52  ;;  %1087 = vmatprep.subr.bf16.mxu0 %v1818_v53  ;;  %v1899_v52 = vld [vmem:[%s2372_s9 + $0x3c8] ss:$16 sps:$4 sm:$0xff]   ;;  %v1904_v53 = vld [vmem:[%s2372_s9 + $0x1ac] ss:$16 sps:$4 sm:$0xff]  }
  0xa4   : > { %1130 = vmatprep.subr.bf16.mxu1 %v1820_v56  ;;  %v1905_v56 = vld [vmem:[%s2372_s9 + $0x3a8] ss:$16 sps:$4 sm:$0xff]  }
  0xa6   : > { %1088 = vmatpush2.bf16.msra.mxu0 %v1822_v57  ;;  %v1910_v57 = vld [vmem:[%s2372_s9 + $0x18c] ss:$16 sps:$4 sm:$0xff]  }
  0xa7   : > { %1131 = vmatpush2.bf16.msra.mxu1 %v1823_v58  ;;  %1089 = vmatprep.subr.bf16.mxu0 %v1824_v59  ;;  %v1913_v58 = vld [vmem:[%s2372_s9 + $0x38c] ss:$16 sps:$4 sm:$0xff]   ;;  %v1908_v59 = vld [vmem:[%s2372_s9 + $0x188] ss:$16 sps:$4 sm:$0xff]  }
  0xa8   : > { %1132 = vmatprep.subr.bf16.mxu1 %v1826_v60  ;;  %v1911_v60 = vld [vmem:[%s2372_s9 + $0x388] ss:$16 sps:$4 sm:$0xff]  }
  0xaa   : > { %1090 = vmatpush2.bf16.msra.mxu0 %v1828_v61  ;;  %v1916_v61 = vld [vmem:[%s2372_s9 + $0x16c] ss:$16 sps:$4 sm:$0xff]  }
  0xab   : > { %1133 = vmatpush2.bf16.msra.mxu1 %v1829_v62  ;;  %1091 = vmatprep.subr.bf16.mxu0 %v1830_v63  ;;  %v1919_v62 = vld [vmem:[%s2372_s9 + $0x36c] ss:$16 sps:$4 sm:$0xff]   ;;  %v1914_v63 = vld [vmem:[%s2372_s9 + $0x168] ss:$16 sps:$4 sm:$0xff]  }
  0xac   : > { %1134 = vmatprep.subr.bf16.mxu1 %v1832_v0  ;;  %v1917_v0 = vld [vmem:[%s2372_s9 + $0x368] ss:$16 sps:$4 sm:$0xff]  }
  0xae   : > { %1092 = vmatpush2.bf16.msra.mxu0 %v1834_v1  ;;  %v1922_v1 = vld [vmem:[%s2372_s9 + $0x14c] ss:$16 sps:$4 sm:$0xff]  }
  0xaf   : > { %1135 = vmatpush2.bf16.msra.mxu1 %v1835_v2  ;;  %1093 = vmatprep.subr.bf16.mxu0 %v1836_v3  ;;  %v1925_v2 = vld [vmem:[%s2372_s9 + $0x34c] ss:$16 sps:$4 sm:$0xff]   ;;  %v1920_v3 = vld [vmem:[%s2372_s9 + $0x148] ss:$16 sps:$4 sm:$0xff]  }
  0xb0   : > { %1136 = vmatprep.subr.bf16.mxu1 %v1838_v4  ;;  %v1923_v4 = vld [vmem:[%s2372_s9 + $0x348] ss:$16 sps:$4 sm:$0xff]  }
  0xb2   : > { %1094 = vmatpush2.bf16.msra.mxu0 %v1840_v5  ;;  %v1928_v5 = vld [vmem:[%s2372_s9 + $0x12c] ss:$16 sps:$4 sm:$0xff]  }
  0xb3   : > { %1137 = vmatpush2.bf16.msra.mxu1 %v1841_v6  ;;  %1149 = vmatprep.subr.bf16.mxu0 %v1844_v11  ;;  %v1931_v6 = vld [vmem:[%s2372_s9 + $0x32c] ss:$16 sps:$4 sm:$0xff]   ;;  %v1932_v11 = vld [vmem:[%s2372_s9 + $0x108] ss:$16 sps:$4 sm:$0xff]  }
  0xb4   : > { %1192 = vmatprep.subr.bf16.mxu1 %v1847_v12  ;;  %v1935_v12 = vld [vmem:[%s2372_s9 + $0x308] ss:$16 sps:$4 sm:$0xff]  }
  0xb5   : > { %1096 = vmatmul.mubr.bf16.vlgmr.msra.gmra.mxu0 %v2477_v13 }
  0xb6   : > { %1139 = vmatmul.mubr.bf16.vlgmr.msra.gmra.mxu1 %v2479_v14  ;;  %1150 = vmatpush1.bf16.msra.mxu0 %v1842_v15 }
  0xb7   : > { %1193 = vmatpush1.bf16.msra.mxu1 %v1845_v16  ;;  %1151 = vmatprep.subr.bf16.mxu0 %v1850_v17  ;;  %v287_v16 = vld [vmem:[%s2389_s26] sm:$0xff] }
  0xb8   : > { %1194 = vmatprep.subr.bf16.mxu1 %v1853_v18  ;;  %1181 = vmatprep.mubr.bf16.mxu0 %v284_v54  ;;  %v1907_v54 = vld [vmem:[%s2372_s9 + $0x3ac] ss:$16 sps:$4 sm:$0xff]  }
  0xb9   : > { %1224 = vmatprep.mubr.bf16.mxu1 %v286_v55  ;;  %v1902_v55 = vld [vmem:[%s2372_s9 + $0x1a8] ss:$16 sps:$4 sm:$0xff]  }
  0xba   : > { %1152 = vmatpush1.bf16.msra.mxu0 %v1848_v19 }
  0xbb   : > { %1195 = vmatpush1.bf16.msra.mxu1 %v1851_v20  ;;  %1153 = vmatprep.subr.bf16.mxu0 %v1856_v21  ;;  %v288_v20 = vld [vmem:[%s2389_s26 + $0x8] sm:$0xff] }
  0xbc   : > { %1196 = vmatprep.subr.bf16.mxu1 %v1859_v22 }
  0xbe   : > { %1154 = vmatpush1.bf16.msra.mxu0 %v1854_v23 }
  0xbf   : > { %1197 = vmatpush1.bf16.msra.mxu1 %v1857_v24  ;;  %1155 = vmatprep.subr.bf16.mxu0 %v1862_v25  ;;  %v291_v25 = vld [vmem:[%s2389_s26 + $0x20] sm:$0xff] }
  0xc0   : > { %1198 = vmatprep.subr.bf16.mxu1 %v1865_v26 }
  0xc2   : > { %1156 = vmatpush1.bf16.msra.mxu0 %v1860_v27 }
  0xc3   : > { %1199 = vmatpush1.bf16.msra.mxu1 %v1863_v28  ;;  %1157 = vmatprep.subr.bf16.mxu0 %v1868_v29  ;;  %v292_v28 = vld [vmem:[%s2389_s26 + $0x28] sm:$0xff] }
  0xc4   : > { %1200 = vmatprep.subr.bf16.mxu1 %v1871_v30 }
  0xc6   : > { %1158 = vmatpush1.bf16.msra.mxu0 %v1866_v31 }
  0xc7   : > { %1201 = vmatpush1.bf16.msra.mxu1 %v1869_v32  ;;  %1159 = vmatprep.subr.bf16.mxu0 %v1874_v33 }
  0xc8   : > { %1202 = vmatprep.subr.bf16.mxu1 %v1877_v34  ;;  %v289_v34 = vld [vmem:[%s2389_s26 + $0x10] sm:$0xff] }
  0xca   : > { %1160 = vmatpush1.bf16.msra.mxu0 %v1872_v35 }
  0xcb   : > { %1203 = vmatpush1.bf16.msra.mxu1 %v1875_v36  ;;  %1161 = vmatprep.subr.bf16.mxu0 %v1880_v37 }
  0xcc   : > { %1204 = vmatprep.subr.bf16.mxu1 %v1883_v38  ;;  %v290_v38 = vld [vmem:[%s2389_s26 + $0x18] sm:$0xff] }
  0xce   : > { %1162 = vmatpush1.bf16.msra.mxu0 %v1878_v39 }
  0xcf   : > { %1205 = vmatpush1.bf16.msra.mxu1 %v1881_v40  ;;  %1163 = vmatprep.subr.bf16.mxu0 %v1886_v41 }
  0xd0   : > { %1206 = vmatprep.subr.bf16.mxu1 %v1889_v42 }
  0xd2   : > { %1164 = vmatpush1.bf16.msra.mxu0 %v1884_v43  ;;  %v293_v43 = vld [vmem:[%s2389_s26 + $0x30] sm:$0xff] }
  0xd3   : > { %1207 = vmatpush1.bf16.msra.mxu1 %v1887_v44  ;;  %1165 = vmatprep.subr.bf16.mxu0 %v1892_v45 }
  0xd4   : > { %1208 = vmatprep.subr.bf16.mxu1 %v1895_v46 }
  0xd6   : > { %1166 = vmatpush2.bf16.msra.mxu0 %v1890_v47 }
  0xd7   : > { %1209 = vmatpush2.bf16.msra.mxu1 %v1893_v48  ;;  %1167 = vmatprep.subr.bf16.mxu0 %v1898_v49  ;;  %v294_v48 = vld [vmem:[%s2389_s26 + $0x38] sm:$0xff] }
  0xd8   : > { %1210 = vmatprep.subr.bf16.mxu1 %v1901_v50 }
  0xda   : > { %1168 = vmatpush2.bf16.msra.mxu0 %v1896_v51 }
  0xdb   : > { %1211 = vmatpush2.bf16.msra.mxu1 %v1899_v52  ;;  %1169 = vmatprep.subr.bf16.mxu0 %v1904_v53 }
  0xdc   : > { %1212 = vmatprep.subr.bf16.mxu1 %v1907_v54 }
  0xde   : > { %1170 = vmatpush2.bf16.msra.mxu0 %v1902_v55 }
  0xdf   : > { %1213 = vmatpush2.bf16.msra.mxu1 %v1905_v56  ;;  %1171 = vmatprep.subr.bf16.mxu0 %v1910_v57 }
  0xe0   : > { %1214 = vmatprep.subr.bf16.mxu1 %v1913_v58 }
  0xe2   : > { %1172 = vmatpush2.bf16.msra.mxu0 %v1908_v59 }
  0xe3   : > { %1215 = vmatpush2.bf16.msra.mxu1 %v1911_v60  ;;  %1173 = vmatprep.subr.bf16.mxu0 %v1916_v61 }
  0xe4   : > { %1216 = vmatprep.subr.bf16.mxu1 %v1919_v62 }
  0xe6   : > { %1174 = vmatpush2.bf16.msra.mxu0 %v1914_v63 }
  0xe7   : > { %1217 = vmatpush2.bf16.msra.mxu1 %v1917_v0  ;;  %1175 = vmatprep.subr.bf16.mxu0 %v1922_v1 }
  0xe8   : > { %1218 = vmatprep.subr.bf16.mxu1 %v1925_v2 }
  0xea   : > { %1176 = vmatpush2.bf16.msra.mxu0 %v1920_v3 }
  0xeb   : > { %1219 = vmatpush2.bf16.msra.mxu1 %v1923_v4  ;;  %1177 = vmatprep.subr.bf16.mxu0 %v1928_v5 }
  0xec   : > { %1220 = vmatprep.subr.bf16.mxu1 %v1931_v6 }
  0xee   : > { %1178 = vmatpush2.bf16.msra.mxu0 %v1926_v7 }
  0xef   : > { %1221 = vmatpush2.bf16.msra.mxu1 %v1929_v8  ;;  %1179 = vmatprep.subr.bf16.mxu0 %v1934_v9 }
  0xf0   : > { %1222 = vmatprep.subr.bf16.mxu1 %v1937_v10 }
  0xf2   : > { %1180 = vmatpush2.bf16.msra.mxu0 %v1932_v11 }
  0xf3   : > { %1223 = vmatpush2.bf16.msra.mxu1 %v1935_v12 }
  0xf5   : > { %1182 = vmatmul.mubr.bf16.vlgmr.msra.gmra.mxu0 %v2477_v13 }
  0xf6   : > { %1225 = vmatmul.mubr.bf16.vlgmr.msra.gmra.mxu1 %v2479_v14 }
 0x175   : > { %v1097_v15 = vpop.f32.mrf.mxu0 }
 0x176   : > { %v1140_v17 = vpop.f32.mrf.mxu1 }
 0x177   : > { %v1141_v18 = vadd.f32 %v1140_v17, %v1097_v15  ;;  %v1099_v19 = vpop.f32.mrf.mxu0 }
 0x178   : > { %v1142_v21 = vpop.f32.mrf.mxu1 }
 0x179   : > { %v1235_v22 = vadd.f32 %v1141_v18, %v287_v16  ;;  %v1143_v23 = vadd.f32 %v1142_v21, %v1099_v19  ;;  %v1101_v24 = vpop.f32.mrf.mxu0 }
 0x17a   : > { %v1144_v26 = vpop.f32.mrf.mxu1 }
 0x17b   : > { %1243 = vst [vmem:[%s2389_s26] sm:$0xff] %v1235_v22  ;;  %v1236_v13 = vadd.f32 %v1143_v23, %v288_v20  ;;  %v1145_v14 = vadd.f32 %v1144_v26, %v1101_v24  ;;  %v1103_v27 = vpop.f32.mrf.mxu0 }
 0x17c   : > { %v1146_v29 = vpop.f32.mrf.mxu1 }
 0x17d   : > { %1244 = vst [vmem:[%s2389_s26 + $0x8] sm:$0xff] %v1236_v13  ;;  %v1239_v30 = vadd.f32 %v1145_v14, %v291_v25  ;;  %v1147_v31 = vadd.f32 %v1146_v29, %v1103_v27 }
 0x17f   : > { %1247 = vst [vmem:[%s2389_s26 + $0x20] sm:$0xff] %v1239_v30  ;;  %v1240_v32 = vadd.f32 %v1147_v31, %v292_v28 }
 0x181   : > { %1248 = vst [vmem:[%s2389_s26 + $0x28] sm:$0xff] %v1240_v32 }
 0x1b5   : > { %v1183_v33 = vpop.f32.mrf.mxu0 }
 0x1b6   : > { %v1226_v35 = vpop.f32.mrf.mxu1 }
 0x1b7   : > { %v1227_v36 = vadd.f32 %v1226_v35, %v1183_v33  ;;  %v1185_v37 = vpop.f32.mrf.mxu0 }
 0x1b8   : > { %v1228_v39 = vpop.f32.mrf.mxu1 }
 0x1b9   : > { %v1237_v40 = vadd.f32 %v1227_v36, %v289_v34  ;;  %v1229_v41 = vadd.f32 %v1228_v39, %v1185_v37  ;;  %v1187_v42 = vpop.f32.mrf.mxu0 }
 0x1ba   : > { %v1230_v44 = vpop.f32.mrf.mxu1 }
 0x1bb   : > { %1245 = vst [vmem:[%s2389_s26 + $0x10] sm:$0xff] %v1237_v40  ;;  %v1238_v45 = vadd.f32 %v1229_v41, %v290_v38  ;;  %v1231_v46 = vadd.f32 %v1230_v44, %v1187_v42  ;;  %v1189_v47 = vpop.f32.mrf.mxu0 }
 0x1bc   : > { %v1232_v49 = vpop.f32.mrf.mxu1 }
 0x1bd   : > { %1246 = vst [vmem:[%s2389_s26 + $0x18] sm:$0xff] %v1238_v45  ;;  %v1241_v50 = vadd.f32 %v1231_v46, %v293_v43  ;;  %v1233_v51 = vadd.f32 %v1232_v49, %v1189_v47  ;;  %1254 = sbr.rel (%p1609_p9) target bundleno = 469 (0x1d5), region = 52 }
 0x1bf   : > { %1249 = vst [vmem:[%s2389_s26 + $0x30] sm:$0xff] %v1241_v50  ;;  %v1242_v52 = vadd.f32 %v1233_v51, %v294_v48 }
 0x1c1   : > { %1250 = vst [vmem:[%s2389_s26 + $0x38] sm:$0xff] %v1242_v52 }
 0x1c2   : > { %v1265_v53 = vlaneseq  ;;  %v1263_v55 = vld [vmem:[%s2382_s11] sm:$0xf]  ;;  %v1255_v56 = vld [vmem:[%s2389_s26] sm:$0xff]  ;;  %v1256_v58 = vld [vmem:[%s2389_s26 + $0x8] sm:$0xff] }
 0x1c3   : > { %v1257_v62 = vld [vmem:[%s2389_s26 + $0x10] sm:$0xff]  ;;  %v1259_v0 = vld [vmem:[%s2389_s26 + $0x20] sm:$0xff]  ;;  %v1260_v5 = vld [vmem:[%s2389_s26 + $0x28] sm:$0xff] }
 0x1c4   : > { %v1266_v54 = vshrl.u32 %v1265_v53, 7  ;;  %v1258_v63 = vld [vmem:[%s2389_s26 + $0x18] sm:$0xff] }
 0x1c6   : > { %v1267_v57 = vsub.s32 0, %v1266_v54  ;;  %v1271_v59 = vsub.s32 1, %v1266_v54  ;;  %v1275_v60 = vsub.s32 2, %v1266_v54  ;;  %v1279_v61 = vsub.s32 3, %v1266_v54  ;;  %v1261_v6 = vld [vmem:[%s2389_s26 + $0x30] sm:$0xff] }
 0x1c8   : > { %v1268_v1 = vrot.slane %v1263_v55, %v1267_v57  ;;  %v1272_v2 = vrot.slane %v1263_v55, %v1271_v59  ;;  %v1276_v3 = vrot.slane %v1263_v55, %v1275_v60  ;;  %v1280_v4 = vrot.slane %v1263_v55, %v1279_v61  ;;  %v1262_v7 = vld [vmem:[%s2389_s26 + $0x38] sm:$0xff] }
 0x1ca   : > { %v1285_v8 = vadd.f32 %v1268_v1, %v1255_v56  ;;  %v1286_v9 = vadd.f32 %v1272_v2, %v1256_v58  ;;  %v1287_v10 = vadd.f32 %v1276_v3, %v1257_v62  ;;  %v1288_v11 = vadd.f32 %v1280_v4, %v1258_v63 }
 0x1cb   : > { %v1289_v12 = vadd.f32 %v1268_v1, %v1259_v0  ;;  %v1290_v15 = vadd.f32 %v1272_v2, %v1260_v5  ;;  %v1291_v16 = vadd.f32 %v1276_v3, %v1261_v6  ;;  %v1292_v17 = vadd.f32 %v1280_v4, %v1262_v7 }
 0x1cc   : > { %vm1293_vm0 = vcmp.gt.f32.partialorder %v1285_v8, 0.0  ;;  %v1301_v18 = vmul.f32 0.01, %v1285_v8  ;;  %vm1294_vm1 = vcmp.gt.f32.partialorder %v1286_v9, 0.0  ;;  %v1302_v19 = vmul.f32 0.01, %v1286_v9 }
 0x1cd   : > { %vm1295_vm2 = vcmp.gt.f32.partialorder %v1287_v10, 0.0  ;;  %v1303_v20 = vmul.f32 0.01, %v1287_v10  ;;  %vm1296_vm3 = vcmp.gt.f32.partialorder %v1288_v11, 0.0  ;;  %v1304_v21 = vmul.f32 0.01, %v1288_v11 }
 0x1ce   : > { %v1309_v22 = vsel %vm1293_vm0, %v1285_v8, %v1301_v18  ;;  %v1310_v23 = vsel %vm1294_vm1, %v1286_v9, %v1302_v19  ;;  %vm1297_vm4 = vcmp.gt.f32.partialorder %v1289_v12, 0.0  ;;  %v1305_v24 = vmul.f32 0.01, %v1289_v12 }
 0x1cf   : > { %1317 = vst [vmem:[%s2389_s26] sm:$0xff] %v1309_v22  ;;  %1318 = vst [vmem:[%s2389_s26 + $0x8] sm:$0xff] %v1310_v23  ;;  %v1311_v25 = vsel %vm1295_vm2, %v1287_v10, %v1303_v20  ;;  %v1312_v26 = vsel %vm1296_vm3, %v1288_v11, %v1304_v21  ;;  %vm1298_vm5 = vcmp.gt.f32.partialorder %v1290_v15, 0.0  ;;  %v1306_v13 = vmul.f32 0.01, %v1290_v15 }
 0x1d0   : > { %1319 = vst [vmem:[%s2389_s26 + $0x10] sm:$0xff] %v1311_v25  ;;  %1320 = vst [vmem:[%s2389_s26 + $0x18] sm:$0xff] %v1312_v26  ;;  %v1313_v14 = vsel %vm1297_vm4, %v1289_v12, %v1305_v24  ;;  %vm1299_vm6 = vcmp.gt.f32.partialorder %v1291_v16, 0.0  ;;  %v1307_v27 = vmul.f32 0.01, %v1291_v16  ;;  %vm1300_vm7 = vcmp.gt.f32.partialorder %v1292_v17, 0.0 }
 0x1d1   : > { %1321 = vst [vmem:[%s2389_s26 + $0x20] sm:$0xff] %v1313_v14  ;;  %v1314_v28 = vsel %vm1298_vm5, %v1290_v15, %v1306_v13  ;;  %v1308_v29 = vmul.f32 0.01, %v1292_v17 }
 0x1d2   : > { %1322 = vst [vmem:[%s2389_s26 + $0x28] sm:$0xff] %v1314_v28  ;;  %v1315_v30 = vsel %vm1299_vm6, %v1291_v16, %v1307_v27 }
 0x1d3   : > { %1323 = vst [vmem:[%s2389_s26 + $0x30] sm:$0xff] %v1315_v30  ;;  %v1316_v31 = vsel %vm1300_vm7, %v1292_v17, %v1308_v29 }
 0x1d4   : > { %1324 = vst [vmem:[%s2389_s26 + $0x38] sm:$0xff] %v1316_v31 }
 0x1d5 PF: > { %s2683_s18 = sld [smem:[#allocation13_spill]]  ;;  %s1339_s0 = sshll.u32 %s2389_s26, 4  ;;  %s2588_s0 = int_to_ptr.vmem [resolvable:$true] %s1339_s0 }
 0x1d6   : > { %s2684_s24 = sld [smem:[#allocation18_spill]]  ;;  %s1326_s1 = scalar_lea.sflag [#allocation4], %s2379_s29 }
 0x1d7   : > { %s2020_s19 = scalar_lea.vmem %s2588_s0, 1024  ;;  %p2685_p0 = scmp.ne.s32.totalorder %s2676_s23, 0 }
 0x1d8   : > { %p2021_p11 = scmp.ne.s32.totalorder %s2588_s0, %s2020_s19  ;;  %s2159_s8 = smov [#allocation8]  }
 0x1d9   : > { %s2024_s9 = sshll.u32 %s2159_s8, 4  ;;  %s2025_s9 = int_to_ptr.vmem [resolvable:$false] %s2024_s9 }
 0x1da   : > { %p2022_p1 = pnand %p2021_p11, %p2685_p0  ;;  %s2026_s7 = scalar_lea.vmem %s2025_s9, 2048 }
 0x1db   : > { %s1617_s25 = sshll.u32 %s2683_s18, 9  ;;  %p2027_p2 = scmp.lt.s32.totalorder %s2588_s0, %s2025_s9 }
 0x1dc   : > { %s2585_s15 = scalar_lea.hbm %s2684_s24, %s1617_s25  ;;  %p2023_p3 = pneg %p2022_p1 }
 0x1dd   : > { %p2028_p5 = scmp.lt.s32.totalorder %s2026_s7, %s2020_s19 }
 0x1df   : > { %p2029_p6 = por %p2028_p5, %p2027_p2 }
 0x1e1   : > { %p2030_p7 = pnand %p2029_p6, %p2023_p3 }
 0x1e3   : > { %2033 = shalt.err (!%p2030_p7)
}
 0x1e4   : > { %s2034_s11 = scalar_lea.hbm %s2585_s15, 1024  ;;  %s2038_s6 = scalar_lea.hbm %s2684_s24, 7168 }
 0x1e5   : > { %p2035_p13 = scmp.ne.s32.totalorder %s2585_s15, %s2034_s11  ;;  %p2039_p8 = scmp.lt.s32.totalorder %s2585_s15, %s2684_s24 }
 0x1e6   : > { %p2040_p4 = scmp.lt.s32.totalorder %s2038_s6, %s2034_s11 }
 0x1e7   : > { %p2036_p12 = pnand %p2035_p13, %p2685_p0 }
 0x1e8   : > { %p2041_p9 = por %p2040_p4, %p2039_p8 }
 0x1e9   : > { %p2037_p10 = pneg %p2036_p12 }
 0x1eb   : > { %p2042_p11 = pnand %p2041_p9, %p2037_p10 }
 0x1ed   : > { %2045 = shalt.err (!%p2042_p11)
}
 0x1ee   : > { %s2160_s25 = smov 512   ;;  %s2161_s27 = smov 3584  }
 0x1ef   : > { %s2162_s4 = smov 32  }
 0x1f0   : > { %1627 = dma.vmem_to_hbm [thread:$0]  (%p2685_p0), %s2588_s0, 1024, %s2585_s15, %s1326_s1, %s2160_s25, %s2161_s27, %s2162_s4  }
 0x1f1 PF: > { %p1647_p1 = scmp.ge.s32.totalorder %s2148_s22, 2  ;;  %s1354_s19 = sand.u32 1, %s2108_s12  }
 0x1f2   : > { %p2686_p3 = scmp.ne.s32.totalorder %s2678_s3, 0  ;;  %s1355_s8 = scalar_lea.sflag [#allocation4], %s1354_s19 }
 0x1f4   : > { %p1641_p2 = pnand %p1647_p1, %p2686_p3 }
 0x1f6   : > { %p1642_p5 = pneg %p1641_p2 }
 0x1f8   : > { %2103 = dma.done.wait (%p1642_p5), %s1355_s8, 1024  }
 0x1f9   : > { %2105 = vsyncadd (%p1642_p5), %s1355_s8, 4294966272  ;;  %s20_s22 = sadd.s32 1, %s2148_s22   ;;  %s2687_s23 = sld [smem:[#allocation14_spill]] }
 0x1fa   : > { %p17_p6 = scmp.ge.s32.totalorder %s20_s22, 72   ;;  %s2688_s29 = sld [smem:[#allocation15_spill]] }
 0x1fb   : > { %s2689_s12 = smov %s2112_s13  ;;  %s2690_s13 = smov %s2116_s14 }
 0x1fc   : > { %s2691_s14 = smov %s2320_s5  ;;  %s2692_s15 = smov %s2124_s16 }
 0x1fd   : > { %s2693_s16 = smov %s2128_s17  ;;  %s2694_s17 = smov %s2268_s10 }
 0x1fe   : > { %s2695_s18 = smov %s2140_s20  ;;  %s2696_s19 = smov %s2144_s21 }
 0x1ff   : > { %s2697_s20 = smov %s2687_s23  ;;  %19 = sbr.rel (!%p17_p6) target bundleno = 14 (0xe), region = 102 }
 0x200   : > { %s2698_s21 = smov %s2688_s29 }
 0x204   :  { %1360 = vsyncpa [#allocation3], 1 }
 0x205   :  { %1362 = vsyncpa [#allocation3 + $0x1], 1 }
 0x206   :  { %1363 = vsyncpa [#allocation6], 1 }
 0x207   :  { %1365 = vsyncpa [#allocation6 + $0x1], 1 }
 0x208   :  { %1366 = vsyncpa [#allocation4], 1 }
 0x209   :  { %1368 = vsyncpa [#allocation4 + $0x1], 1 }

</bundles_post_ra>
